<compile_context>
chip_gen: v5e
topology: v5e:2x2
jax: 0.10.0
libtpu: 0.0.40
codegen_flags: <defaults>
</compile_context>

<pallas_src>
import functools

import jax
import jax.numpy as jnp
from jax.experimental import pallas as pl
from jax.experimental.pallas import tpu as pltpu


def _round_up(x, m):
    return -(-x // m) * m


def _pick_tile_b(batch, max_tile_b):
    """Lane-aligned (multiple-of-128) batch tile.

    Few fat tiles amortize the ~0.35 us per-grid-step overhead; once the batch
    is big enough we keep >= 2 tiles so the "parallel" batch axis spans both
    TensorCores on v7x.
    """
    b128 = _round_up(max(int(batch), 1), 128)
    if b128 <= 256:
        return 128
    half = _round_up(pl.cdiv(b128, 2), 128)
    return min(_round_up(int(max_tile_b), 128), half)


def _make_critic_kernel(n_layers):
    """Build a fused MLP kernel for `n_layers` Linear layers (ReLU between)."""

    def kernel(*refs):
        sT_ref, aT_ref, w1s_ref, w1a_ref, b1_ref = refs[:5]
        o_ref = refs[-1]
        rest = refs[5:-1]  # (w, b) ref pairs for layers 2..n_layers

        # Layer 1 with the state/action concat fused into two matmuls.
        # bf16 MXU operands, f32 accumulation / bias.
        h = (jnp.dot(w1s_ref[...], sT_ref[...], preferred_element_type=jnp.float32)
             + jnp.dot(w1a_ref[...], aT_ref[...], preferred_element_type=jnp.float32)
             + b1_ref[...])

        for li in range(n_layers - 1):
            h = jnp.maximum(h, 0.0)                    # f32 ReLU on the VPU
            w_ref = rest[2 * li]
            b_ref = rest[2 * li + 1]
            h = jnp.dot(w_ref[...], h.astype(w_ref.dtype),   # bf16 MXU operands
                        preferred_element_type=jnp.float32) + b_ref[...]

        o_ref[...] = h.astype(o_ref.dtype)

    return kernel


def _critic_forward_impl(sT, aT, params, tile_b, max_tile_b):
    """Core pallas_call from (feature, batch)-layout inputs. Returns (B, 1)."""
    in_dim, b_size = sT.shape
    act_dim = aT.shape[0]
    n_layers = len(params)

    b128 = _round_up(b_size, 128)
    if tile_b is None:
        tile_b = _pick_tile_b(b_size, max_tile_b)
    else:
        # Guard: the lane constraint wants a multiple of 128 (or the full dim).
        tile_b = max(128, _round_up(int(tile_b), 128))
    tile_b = min(tile_b, b128)
    if tile_b > b_size:
        # Batch smaller than one lane-aligned tile: a single full-extent block
        # (the "equal to the full array dim" form of the lane rule).
        tile_b = b_size
    n_tiles = pl.cdiv(b_size, tile_b)

    # Split W1 into its state / action column blocks (fuses the concat).
    w1, b1 = params[0]
    w1s = w1[:, :in_dim].astype(jnp.bfloat16)       # (hidden, in_dim)
    w1a = w1[:, in_dim:].astype(jnp.bfloat16)       # (hidden, act_dim)

    operands = [sT.astype(jnp.bfloat16), aT.astype(jnp.bfloat16),
                w1s, w1a, b1.astype(jnp.float32)]
    for (w, bias) in params[1:]:
        operands.append(w.astype(jnp.bfloat16))     # (fan_out, fan_in)
        operands.append(bias.astype(jnp.float32))   # (fan_out, 1)

    def tiled(shape):
        return pl.BlockSpec(shape, lambda i: (0, i))

    def resident(arr):
        # Constant index map -> stays VMEM-resident across the whole grid.
        return pl.BlockSpec(arr.shape, lambda i: (0, 0))

    in_specs = [tiled((in_dim, tile_b)), tiled((act_dim, tile_b))]
    in_specs += [resident(op) for op in operands[2:]]

    qT = pl.pallas_call(
        _make_critic_kernel(n_layers),
        out_shape=jax.ShapeDtypeStruct((1, b_size), jnp.float32),
        grid=(n_tiles,),
        in_specs=in_specs,
        out_specs=tiled((1, tile_b)),
        compiler_params=pltpu.CompilerParams(
            dimension_semantics=("parallel",)),
    )(*operands)

    return qT.reshape(b_size, 1)   # (1, B) -> (B, 1): contiguous reshape


@functools.partial(jax.jit, static_argnames=("tile_b", "max_tile_b"))
def critic_forward_t(state_t, action_t, params, tile_b=None, max_tile_b=32768):
    """Forward from already-transposed inputs: state_t (in_dim, B), action_t
    (act_dim, B). Skips the wrapper-side transpose copy entirely."""
    return _critic_forward_impl(state_t, action_t, params, tile_b, max_tile_b)


@functools.partial(jax.jit, static_argnames=("tile_b", "max_tile_b"))
def critic_forward(state, action, params, tile_b=None, max_tile_b=32768):
    """CriticNetwork.forward: state (B, in_dim), action (B, act_dim) -> (B, 1)."""
    # Cast+transpose fuse into one XLA copy (bf16 halves the bytes written).
    sT = state.astype(jnp.bfloat16).T
    aT = action.astype(jnp.bfloat16).T
    return _critic_forward_impl(sT, aT, params, tile_b, max_tile_b)


def init_params(key, input_dim, output_dim, num_neurons):
    """Init mimicking torch.nn.Linear default U[-1/sqrt(fan_in), 1/sqrt(fan_in)].

    Weights kept in PyTorch (fan_out, fan_in) order; biases are (fan_out, 1)."""
    dims = [input_dim + output_dim] + list(num_neurons) + [1]
    params = []
    for i in range(len(dims) - 1):
        fan_in, fan_out = dims[i], dims[i + 1]
        key, kw, kb = jax.random.split(key, 3)
        bound = 1.0 / (fan_in ** 0.5)
        w = jax.random.uniform(kw, (fan_out, fan_in), jnp.float32, -bound, bound)
        bias = jax.random.uniform(kb, (fan_out, 1), jnp.float32, -bound, bound)
        params.append((w, bias))
    return params


def _reference_forward(state, action, params):
    """Pure-JAX reference mirroring the kernel's precision choices
    (bf16 matmul operands, f32 accumulation / bias / ReLU)."""
    h = jnp.concatenate([state, action], axis=1).astype(jnp.bfloat16)
    for i, (w, bias) in enumerate(params):
        h = (jnp.dot(h, w.astype(jnp.bfloat16).T,
                     preferred_element_type=jnp.float32)
             + bias.astype(jnp.float32).T)
        if i < len(params) - 1:
            h = jnp.maximum(h, 0.0).astype(jnp.bfloat16)
    return h


if __name__ == "__main__":
    # Shapes consistent with the module: state dim 4, action dim 1 (default),
    # hidden neurons [8, 8, 8], batch 2.
    batch = 2
    input_dim = 4     # state dimension
    output_dim = 1    # action dimension (module default)
    num_neurons = [8, 8, 8]

    key = jax.random.PRNGKey(0)
    k_state, k_action, k_params, k_state2, k_action2 = jax.random.split(key, 5)

    state = jax.random.normal(k_state, (batch, input_dim), jnp.float32)
    action = jax.random.normal(k_action, (batch, output_dim), jnp.float32)
    params = init_params(k_params, input_dim, output_dim, num_neurons)

    q1 = jax.block_until_ready(critic_forward(state, action, params))
    ref1 = _reference_forward(state, action, params)
    assert q1.shape == (batch, 1)
    assert jnp.allclose(q1, ref1, atol=1e-2, rtol=1e-2)

    # Multi-step ragged grid: B=300, caller-supplied tile_b=100 rounds up to
    # 128 -> 3 tiles, last one only partially valid (masked store, no pad).
    batch2 = 300
    state2 = jax.random.normal(k_state2, (batch2, input_dim), jnp.float32)
    action2 = jax.random.normal(k_action2, (batch2, output_dim), jnp.float32)
    q2 = jax.block_until_ready(critic_forward(state2, action2, params, tile_b=100))
    ref2 = _reference_forward(state2, action2, params)
    assert q2.shape == (batch2, 1)
    assert jnp.allclose(q2, ref2, atol=1e-2, rtol=1e-2)

    # Auto tile selection (2 tiles for megacore) + the transpose-free entry
    # point that takes (feature, batch)-layout inputs directly.
    q3 = jax.block_until_ready(critic_forward_t(state2.T, action2.T, params))
    assert q3.shape == (batch2, 1)
    assert jnp.allclose(q3, ref2, atol=1e-2, rtol=1e-2)

    print("KERNEL_OK")
</pallas_src>

<mosaic_0001>
module attributes {stable_mosaic.version = 11 : i64} {
  func.func @kernel(%arg0: i32, %arg1: memref<4x2xbf16, #tpu.memory_space<vmem>>, %arg2: memref<1x2xbf16, #tpu.memory_space<vmem>>, %arg3: memref<8x4xbf16, #tpu.memory_space<vmem>>, %arg4: memref<8x1xbf16, #tpu.memory_space<vmem>>, %arg5: memref<8x1xf32, #tpu.memory_space<vmem>>, %arg6: memref<8x8xbf16, #tpu.memory_space<vmem>>, %arg7: memref<8x1xf32, #tpu.memory_space<vmem>>, %arg8: memref<8x8xbf16, #tpu.memory_space<vmem>>, %arg9: memref<8x1xf32, #tpu.memory_space<vmem>>, %arg10: memref<1x8xbf16, #tpu.memory_space<vmem>>, %arg11: memref<1x1xf32, #tpu.memory_space<vmem>>, %arg12: memref<1x2xf32, #tpu.memory_space<vmem>>) attributes {dimension_semantics = [#tpu.dimension_semantics<parallel>], iteration_bounds = array<i64: 1>, scalar_prefetch = 0 : i64, scratch_operands = 0 : i64, tpu.core_type = #tpu.core_type<tc>, window_params = [{transform_indices = @transform_0, window_bounds = array<i64: 4, 2>}, {transform_indices = @transform_1, window_bounds = array<i64: 1, 2>}, {pipeline_mode = #tpu.pipeline_mode<synchronous>, transform_indices = @transform_2, window_bounds = array<i64: 8, 4>}, {pipeline_mode = #tpu.pipeline_mode<synchronous>, transform_indices = @transform_3, window_bounds = array<i64: 8, 1>}, {pipeline_mode = #tpu.pipeline_mode<synchronous>, transform_indices = @transform_4, window_bounds = array<i64: 8, 1>}, {pipeline_mode = #tpu.pipeline_mode<synchronous>, transform_indices = @transform_5, window_bounds = array<i64: 8, 8>}, {pipeline_mode = #tpu.pipeline_mode<synchronous>, transform_indices = @transform_6, window_bounds = array<i64: 8, 1>}, {pipeline_mode = #tpu.pipeline_mode<synchronous>, transform_indices = @transform_7, window_bounds = array<i64: 8, 8>}, {pipeline_mode = #tpu.pipeline_mode<synchronous>, transform_indices = @transform_8, window_bounds = array<i64: 8, 1>}, {pipeline_mode = #tpu.pipeline_mode<synchronous>, transform_indices = @transform_9, window_bounds = array<i64: 1, 8>}, {pipeline_mode = #tpu.pipeline_mode<synchronous>, transform_indices = @transform_10, window_bounds = array<i64: 1, 1>}, {transform_indices = @transform_11, window_bounds = array<i64: 1, 2>}]} {
    %c0 = arith.constant 0 : index
    %c0_0 = arith.constant 0 : index
    %0 = vector.load %arg3[%c0, %c0_0] : memref<8x4xbf16, #tpu.memory_space<vmem>>, vector<8x4xbf16>
    %c0_1 = arith.constant 0 : index
    %c0_2 = arith.constant 0 : index
    %1 = vector.load %arg1[%c0_1, %c0_2] : memref<4x2xbf16, #tpu.memory_space<vmem>>, vector<4x2xbf16>
    %cst = arith.constant dense<0.000000e+00> : vector<8x2xf32>
    %2 = tpu.matmul %0, %1, %cst {dimension_numbers = #tpu.dot_dimension_numbers<[1], [0], [0], [1], [0, 0, 1, 1], [], []>} : vector<8x4xbf16>, vector<4x2xbf16>, vector<8x2xf32> -> vector<8x2xf32>
    %c0_3 = arith.constant 0 : index
    %c0_4 = arith.constant 0 : index
    %3 = vector.load %arg4[%c0_3, %c0_4] : memref<8x1xbf16, #tpu.memory_space<vmem>>, vector<8x1xbf16>
    %c0_5 = arith.constant 0 : index
    %c0_6 = arith.constant 0 : index
    %4 = vector.load %arg2[%c0_5, %c0_6] : memref<1x2xbf16, #tpu.memory_space<vmem>>, vector<1x2xbf16>
    %cst_7 = arith.constant dense<0.000000e+00> : vector<8x2xf32>
    %5 = tpu.matmul %3, %4, %cst_7 {dimension_numbers = #tpu.dot_dimension_numbers<[1], [0], [0], [1], [0, 0, 1, 1], [], []>} : vector<8x1xbf16>, vector<1x2xbf16>, vector<8x2xf32> -> vector<8x2xf32>
    %6 = arith.addf %2, %5 : vector<8x2xf32>
    %c0_8 = arith.constant 0 : index
    %c0_9 = arith.constant 0 : index
    %7 = vector.load %arg5[%c0_8, %c0_9] : memref<8x1xf32, #tpu.memory_space<vmem>>, vector<8x1xf32>
    %8 = vector.broadcast %7 : vector<8x1xf32> to vector<8x2xf32>
    %9 = arith.addf %6, %8 : vector<8x2xf32>
    %cst_10 = arith.constant 0.000000e+00 : f32
    %10 = vector.broadcast %cst_10 : f32 to vector<8x2xf32>
    %11 = arith.maximumf %9, %10 : vector<8x2xf32>
    %c0_11 = arith.constant 0 : index
    %c0_12 = arith.constant 0 : index
    %12 = vector.load %arg6[%c0_11, %c0_12] : memref<8x8xbf16, #tpu.memory_space<vmem>>, vector<8x8xbf16>
    %13 = arith.truncf %11 : vector<8x2xf32> to vector<8x2xbf16>
    %cst_13 = arith.constant dense<0.000000e+00> : vector<8x2xf32>
    %14 = tpu.matmul %12, %13, %cst_13 {dimension_numbers = #tpu.dot_dimension_numbers<[1], [0], [0], [1], [0, 0, 1, 1], [], []>} : vector<8x8xbf16>, vector<8x2xbf16>, vector<8x2xf32> -> vector<8x2xf32>
    %c0_14 = arith.constant 0 : index
    %c0_15 = arith.constant 0 : index
    %15 = vector.load %arg7[%c0_14, %c0_15] : memref<8x1xf32, #tpu.memory_space<vmem>>, vector<8x1xf32>
    %16 = vector.broadcast %15 : vector<8x1xf32> to vector<8x2xf32>
    %17 = arith.addf %14, %16 : vector<8x2xf32>
    %cst_16 = arith.constant 0.000000e+00 : f32
    %18 = vector.broadcast %cst_16 : f32 to vector<8x2xf32>
    %19 = arith.maximumf %17, %18 : vector<8x2xf32>
    %c0_17 = arith.constant 0 : index
    %c0_18 = arith.constant 0 : index
    %20 = vector.load %arg8[%c0_17, %c0_18] : memref<8x8xbf16, #tpu.memory_space<vmem>>, vector<8x8xbf16>
    %21 = arith.truncf %19 : vector<8x2xf32> to vector<8x2xbf16>
    %cst_19 = arith.constant dense<0.000000e+00> : vector<8x2xf32>
    %22 = tpu.matmul %20, %21, %cst_19 {dimension_numbers = #tpu.dot_dimension_numbers<[1], [0], [0], [1], [0, 0, 1, 1], [], []>} : vector<8x8xbf16>, vector<8x2xbf16>, vector<8x2xf32> -> vector<8x2xf32>
    %c0_20 = arith.constant 0 : index
    %c0_21 = arith.constant 0 : index
    %23 = vector.load %arg9[%c0_20, %c0_21] : memref<8x1xf32, #tpu.memory_space<vmem>>, vector<8x1xf32>
    %24 = vector.broadcast %23 : vector<8x1xf32> to vector<8x2xf32>
    %25 = arith.addf %22, %24 : vector<8x2xf32>
    %cst_22 = arith.constant 0.000000e+00 : f32
    %26 = vector.broadcast %cst_22 : f32 to vector<8x2xf32>
    %27 = arith.maximumf %25, %26 : vector<8x2xf32>
    %c0_23 = arith.constant 0 : index
    %c0_24 = arith.constant 0 : index
    %28 = vector.load %arg10[%c0_23, %c0_24] : memref<1x8xbf16, #tpu.memory_space<vmem>>, vector<1x8xbf16>
    %29 = arith.truncf %27 : vector<8x2xf32> to vector<8x2xbf16>
    %cst_25 = arith.constant dense<0.000000e+00> : vector<1x2xf32>
    %30 = tpu.matmul %28, %29, %cst_25 {dimension_numbers = #tpu.dot_dimension_numbers<[1], [0], [0], [1], [0, 0, 1, 1], [], []>} : vector<1x8xbf16>, vector<8x2xbf16>, vector<1x2xf32> -> vector<1x2xf32>
    %c0_26 = arith.constant 0 : index
    %c0_27 = arith.constant 0 : index
    %31 = vector.load %arg11[%c0_26, %c0_27] : memref<1x1xf32, #tpu.memory_space<vmem>>, vector<1x1xf32>
    %32 = vector.broadcast %31 : vector<1x1xf32> to vector<1x2xf32>
    %33 = arith.addf %30, %32 : vector<1x2xf32>
    %c0_28 = arith.constant 0 : index
    %c0_29 = arith.constant 0 : index
    %34 = vector.load %arg12[%c0_28, %c0_29] : memref<1x2xf32, #tpu.memory_space<vmem>>, vector<1x2xf32>
    tpu.vector_store %arg12[%c0_28, %c0_29], %33 {strides = array<i32>} : memref<1x2xf32, #tpu.memory_space<vmem>>, vector<1x2xf32>,
    return
  }
  func.func @transform_0(%arg0: i32) -> (i32, i32) {
    %c0_i32 = arith.constant 0 : i32
    %c0_i32_0 = arith.constant 0 : i32
    return %c0_i32, %arg0 : i32, i32
  }
  func.func @transform_1(%arg0: i32) -> (i32, i32) {
    %c0_i32 = arith.constant 0 : i32
    %c0_i32_0 = arith.constant 0 : i32
    return %c0_i32, %arg0 : i32, i32
  }
  func.func @transform_2(%arg0: i32) -> (i32, i32) {
    %c0_i32 = arith.constant 0 : i32
    %c0_i32_0 = arith.constant 0 : i32
    %c0_i32_1 = arith.constant 0 : i32
    return %c0_i32, %c0_i32_0 : i32, i32
  }
  func.func @transform_3(%arg0: i32) -> (i32, i32) {
    %c0_i32 = arith.constant 0 : i32
    %c0_i32_0 = arith.constant 0 : i32
    %c0_i32_1 = arith.constant 0 : i32
    return %c0_i32, %c0_i32_0 : i32, i32
  }
  func.func @transform_4(%arg0: i32) -> (i32, i32) {
    %c0_i32 = arith.constant 0 : i32
    %c0_i32_0 = arith.constant 0 : i32
    %c0_i32_1 = arith.constant 0 : i32
    return %c0_i32, %c0_i32_0 : i32, i32
  }
  func.func @transform_5(%arg0: i32) -> (i32, i32) {
    %c0_i32 = arith.constant 0 : i32
    %c0_i32_0 = arith.constant 0 : i32
    %c0_i32_1 = arith.constant 0 : i32
    return %c0_i32, %c0_i32_0 : i32, i32
  }
  func.func @transform_6(%arg0: i32) -> (i32, i32) {
    %c0_i32 = arith.constant 0 : i32
    %c0_i32_0 = arith.constant 0 : i32
    %c0_i32_1 = arith.constant 0 : i32
    return %c0_i32, %c0_i32_0 : i32, i32
  }
  func.func @transform_7(%arg0: i32) -> (i32, i32) {
    %c0_i32 = arith.constant 0 : i32
    %c0_i32_0 = arith.constant 0 : i32
    %c0_i32_1 = arith.constant 0 : i32
    return %c0_i32, %c0_i32_0 : i32, i32
  }
  func.func @transform_8(%arg0: i32) -> (i32, i32) {
    %c0_i32 = arith.constant 0 : i32
    %c0_i32_0 = arith.constant 0 : i32
    %c0_i32_1 = arith.constant 0 : i32
    return %c0_i32, %c0_i32_0 : i32, i32
  }
  func.func @transform_9(%arg0: i32) -> (i32, i32) {
    %c0_i32 = arith.constant 0 : i32
    %c0_i32_0 = arith.constant 0 : i32
    %c0_i32_1 = arith.constant 0 : i32
    return %c0_i32, %c0_i32_0 : i32, i32
  }
  func.func @transform_10(%arg0: i32) -> (i32, i32) {
    %c0_i32 = arith.constant 0 : i32
    %c0_i32_0 = arith.constant 0 : i32
    %c0_i32_1 = arith.constant 0 : i32
    return %c0_i32, %c0_i32_0 : i32, i32
  }
  func.func @transform_11(%arg0: i32) -> (i32, i32) {
    %c0_i32 = arith.constant 0 : i32
    %c0_i32_0 = arith.constant 0 : i32
    return %c0_i32, %arg0 : i32, i32
  }
}

</mosaic_0001>

<bundles_post_ra>
// kernel: critic_forward.1
= control target key start
LH: loop header
LB: loop body
LE: loop exit
PB: predicated region body
PF: predicated region fallthrough
CT: control target
= control target key end

     0   :  { %s341_s0 = inlined_call_operand.vmem [shape: bf16[4,2], index: 0, kind: input, shape index: {}]   ;;  %s342_s1 = inlined_call_operand.vmem [shape: bf16[1,2], index: 1, kind: input, shape index: {}]   ;;  %s343_s2 = inlined_call_operand.vmem [shape: bf16[8,4], index: 2, kind: input, shape index: {}]   ;;  %s344_s3 = inlined_call_operand.vmem [shape: bf16[8,1], index: 3, kind: input, shape index: {}]   ;;  %s345_s4 = inlined_call_operand.vmem [shape: f32[8,1], index: 4, kind: input, shape index: {}]   ;;  %s346_s5 = inlined_call_operand.vmem [shape: bf16[8,8], index: 5, kind: input, shape index: {}]   ;;  %s347_s6 = inlined_call_operand.vmem [shape: f32[8,1], index: 6, kind: input, shape index: {}]   ;;  %s348_s7 = inlined_call_operand.vmem [shape: bf16[8,8], index: 7, kind: input, shape index: {}]   ;;  %s349_s8 = inlined_call_operand.vmem [shape: f32[8,1], index: 8, kind: input, shape index: {}]   ;;  %s350_s9 = inlined_call_operand.vmem [shape: bf16[1,8], index: 9, kind: input, shape index: {}]   ;;  %s351_s10 = inlined_call_operand.<no memory space> [shape: f32[1,1], index: 10, kind: input, shape index: {}]   ;;  %s352_s11 = inlined_call_operand.hbm [shape: f32[1,2], index: 11, kind: output, shape index: {}]  }
   0x1   :  { %v16_v0 = vstv %s351_s10 }
   0x2   :  { %17 = vst [vmem:[#allocation2] sm:$0x1] %v16_v0 }
   0x3   :  { %v43_v1 = vld [vmem:[%s341_s0] sm:$0x3]  ;;  %vm73_vm0 = vcmask 1041408   ;;  %vm50_vm1 = vcmask 1040384   ;;  %v237_v4 = vmov 0   ;;  %vm69_vm2 = vcmask 31744  }
   0x4   :  { %v45_v2 = vld [vmem:[%s342_s1] sm:$0x1]  ;;  %v75_v3 = vsel %vm73_vm0, %v43_v1, 0  ;;  %v52_v5 = vsel %vm50_vm1, 65535, %v237_v4  ;;  %209 = vset.pattern.permute.xlu0 %v237_v4  ;;  %210 = vset.pattern.permute.xlu1 %v237_v4 }
   0x5   :  { %84 = vmatpush.bf16.msra.mxu1 %v75_v3  ;;  %v42_v6 = vld [vmem:[%s343_s2] sm:$0xf]  ;;  %v54_v8 = vand.u32 %v52_v5, %v45_v2 }
   0x6   :  { %v90_v7 = vld [vmem:[%s345_s4] sm:$0xff] }
   0x7   :  { %93 = vperm.xlu0 %209, %v90_v7  }
   0x8   :  { %18 = vsyncpa [#allocation4], 0  ;;  %63 = vmatpush.bf16.msra.mxu0 %v54_v8  ;;  %203 = vmatmul.msk.bf16.vlgmr.msra.gmra.mxu1 %vm69_vm2, %v42_v6  ;;  %v44_v9 = vld [vmem:[%s344_s3] sm:$0xf]  ;;  %vm46_vm3 = vcmask 7168   ;;  %vm110_vm4 = vcmask 1043456  }
   0x9   :  { %v100_v10 = vld [vmem:[%s347_s6] sm:$0xff]  ;;  %vm106_vm5 = vcmask 64512   ;;  %s238_s30 = smov [#allocation3]   ;;  %s193_s14 = sshll.u32 %s352_s11, 4  ;;  %vm184_vm6 = vcmask 8192   ;;  %s194_s14 = int_to_ptr.hbm [resolvable:$true] %s193_s14 }
   0xa   :  { %v98_v21 = vld [vmem:[%s346_s5] sm:$0xf] }
   0xb   :  { %202 = vmatmul.msk.bf16.vlgmr.msra.gmra.mxu0 %vm46_vm3, %v44_v9  ;;  %v130_v22 = vld [vmem:[%s349_s8] sm:$0xff] }
   0xc   :  { %133 = vperm.xlu1 %210, %v130_v22   ;;  %v158_v23 = vld [vmem:[#allocation2] sm:$0x1] }
   0xd   :  { %v128_v31 = vld [vmem:[%s348_s7] sm:$0xf]  ;;  %s191_s7 = sshll.u32 %s238_s30, 4  ;;  %s192_s7 = int_to_ptr.vmem [resolvable:$true] %s191_s7 }
   0xe   :  { %v156_v39 = vld [vmem:[%s350_s9] sm:$0x1] }
   0xf   :  { %103 = vperm.xlu0 %209, %v100_v10  }
  0x14   :  { %161 = vperm.xlu1 %210, %v158_v23  }
  0x79   :  { %v94_v14 = vpop.permute.xlu0 %93 }
  0x7e   :  { %v134_v32 = vpop.permute.xlu1 %133 }
  0x81   :  { %v104_v24 = vpop.permute.xlu0 %103 }
  0x85   :  { %v86_v11 = vpop.f32.mrf.mxu1 }
  0x86   :  { %v162_v40 = vpop.permute.xlu1 %161 }
  0x87   :  { %v164_v41 = vperm.slane %v162_v40, 0 }
  0x88   :  { %v65_v12 = vpop.f32.mrf.mxu0 }
  0x89   :  { %v87_v13 = vadd.f32 %v86_v11, %v65_v12 }
  0x8b   :  { %v96_v15 = vadd.f32 %v94_v14, %v87_v13 }
  0x8d   :  { %v88_v16 = vpop.f32.mrf.mxu1  ;;  %v97_v17 = vmax.f32 %v96_v15, 0.0 }
  0x8f   :  { %v99_v18 = vpack.c.bf16 %v97_v17, %v97_v17 }
  0x90   :  { %v67_v19 = vpop.f32.mrf.mxu0 }
  0x91   :  { %v112_v20 = vsel %vm110_vm4, %v99_v18, 0 }
  0x92   :  { %121 = vmatpush.bf16.msra.mxu2 %v112_v20 }
  0x95   :  { %204 = vmatmul.msk.bf16.vlgmr.msra.gmra.mxu2 %vm106_vm5, %v98_v21 }
 0x118   :  { %v123_v25 = vpop.f32.mrf.mxu2 }
 0x119   :  { %v124_v26 = vadd.f32 %v123_v25, %v104_v24 }
 0x11b   :  { %v127_v27 = vmax.f32 %v124_v26, 0.0 }
 0x11d   :  { %v129_v28 = vpack.c.bf16 %v127_v27, %v127_v27 }
 0x11f   :  { %v140_v29 = vsel %vm110_vm4, %v129_v28, 0 }
 0x120   :  { %v125_v30 = vpop.f32.mrf.mxu2  ;;  %149 = vmatpush.bf16.msra.mxu3 %v140_v29 }
 0x123   :  { %205 = vmatmul.msk.bf16.vlgmr.msra.gmra.mxu3 %vm106_vm5, %v128_v31 }
 0x1a6   :  { %v151_v33 = vpop.f32.mrf.mxu3 }
 0x1a7   :  { %v152_v34 = vadd.f32 %v151_v33, %v134_v32 }
 0x1a9   :  { %v155_v35 = vmax.f32 %v152_v34, 0.0 }
 0x1ab   :  { %v157_v36 = vpack.c.bf16 %v155_v35, %v155_v35 }
 0x1ad   :  { %v169_v37 = vsel %vm110_vm4, %v157_v36, 0 }
 0x1ae   :  { %v153_v38 = vpop.f32.mrf.mxu3  ;;  %178 = vmatpush.bf16.msrb.mxu0 %v169_v37 }
 0x1b1   :  { %206 = vmatmul.msk.bf16.vlgmr.msrb.gmra.mxu0 %vm106_vm5, %v156_v39 }
 0x22e   :  { %v180_v42 = vpop.f32.mrf.mxu0 }
 0x22f   :  { %v181_v43 = vadd.f32 %v180_v42, %v164_v41 }
 0x231   :  { %185 = vst.msk [vmem:[#allocation3] sm:$0x1] %vm184_vm6, %v181_v43 }
 0x232   :  { %196 = dma.vmem_to_hbm [thread:$0]  %s192_s7, 16, %s194_s14, [#allocation4]  }
 0x236   :  { %v182_v44 = vpop.f32.mrf.mxu0 }
 0x237   :  { %235 = dma.done.wait [#allocation4], 16  }
 0x238   :  { %236 = vsyncadd [#allocation4], 4294967280 }
 0x239   :  { %201 = vsyncpa [#allocation4], 1 }

</bundles_post_ra>
